<compile_context>
chip_gen: v5e
topology: v5e:2x2
jax: 0.10.0
libtpu: 0.0.40
codegen_flags: <defaults>
</compile_context>

<pallas_src>
import functools

import jax
import jax.numpy as jnp
from jax.experimental import pallas as pl
from jax.experimental.pallas import tpu as pltpu

TILE_ROWS = 1024     # sublane rows per grid step -> 512 KiB f32 per input block
LANES = 128          # TPU lane width


def _pow_focusing(x, gamma):
    """x**gamma. Integer gamma -> repeated multiply (VPU); else lax.pow (EUP)."""
    g = float(gamma)
    if g.is_integer() and 0.0 <= g <= 16.0:
        gi = int(g)
        if gi == 0:
            return jnp.ones_like(x)
        out = x
        for _ in range(gi - 1):
            out = out * x
        return out
    return jnp.power(x, jnp.float32(g))


def _focal_loss_kernel(x_ref, t_ref, o_ref, *, tile_rows, full_rows, lane_rem,
                       n_tiles, needs_mask, alpha, gamma):
    """One grid step: compute focal loss on a (tile_rows, 128) tile and write a
    per-tile partial sum to its own SMEM output slot."""
    step = pl.program_id(0)

    def emit(masked):
        x = x_ref[...]                          # (tile_rows, 128) f32 probabilities
        t = t_ref[...]                          # (tile_rows, 128) targets (narrow dtype ok)
        probs = jnp.where(t != 0, x, 1.0 - x)
        one_m = 1.0 - probs
        log_p = jnp.log(probs)
        loss = (-alpha) * _pow_focusing(one_m, gamma) * log_p + 1e-08
        if masked:
            # Row-based mask (no 32-bit flat-index overflow): rows < full_rows are
            # entirely valid; row == full_rows is valid only for the first lane_rem lanes.
            row = step * tile_rows + jax.lax.broadcasted_iota(jnp.int32, loss.shape, 0)
            valid = row < full_rows
            if lane_rem:
                col = jax.lax.broadcasted_iota(jnp.int32, loss.shape, 1)
                valid = jnp.logical_or(
                    valid, jnp.logical_and(row == full_rows, col < lane_rem))
            loss = jnp.where(valid, loss, 0.0)
        o_ref[0, 0] = jnp.sum(loss)             # per-tile partial sum -> SMEM scalar

    if needs_mask:
        if n_tiles == 1:
            emit(True)
        else:
            last = n_tiles - 1
            pl.when(step != last)(lambda: emit(False))   # hot path: no mask work
            pl.when(step == last)(lambda: emit(True))    # only the partial tile is masked
    else:
        emit(False)


def focal_loss(inputs, targets, alpha=1.0, gamma=2.0, size_average=True):
    """JAX wrapper: flatten, (minimally) pad to a lane multiple, tile, launch."""
    x = inputs.reshape(-1).astype(jnp.float32)
    t = targets.reshape(-1)
    if t.dtype == jnp.bool_:
        t = t.astype(jnp.int8)                  # keep targets narrow; never upcast to f32
    n = x.shape[0]
    if n == 0:
        raise ValueError("focal_loss: empty input")

    lane_rem = n % LANES
    if lane_rem:
        pad = LANES - lane_rem                  # at most 127 elements
        x = jnp.pad(x, (0, pad), constant_values=0.5)   # safe values; masked in-kernel
        t = jnp.pad(t, (0, pad), constant_values=1)

    rows = x.shape[0] // LANES
    x2 = x.reshape(rows, LANES)
    t2 = t.reshape(rows, LANES)

    tile_rows = min(TILE_ROWS, rows)            # full-dim block for tiny inputs
    n_tiles = pl.cdiv(rows, tile_rows)
    full_rows = n // LANES                      # rows that are entirely valid
    needs_mask = (lane_rem != 0) or (full_rows != n_tiles * tile_rows)

    kernel = functools.partial(
        _focal_loss_kernel,
        tile_rows=tile_rows, full_rows=full_rows, lane_rem=lane_rem,
        n_tiles=n_tiles, needs_mask=needs_mask,
        alpha=float(alpha), gamma=float(gamma),
    )

    partials = pl.pallas_call(
        kernel,
        out_shape=jax.ShapeDtypeStruct((n_tiles, 1), jnp.float32),
        grid_spec=pltpu.PrefetchScalarGridSpec(
            num_scalar_prefetch=0,
            grid=(n_tiles,),
            in_specs=[
                pl.BlockSpec((tile_rows, LANES), lambda i: (i, 0)),
                pl.BlockSpec((tile_rows, LANES), lambda i: (i, 0)),
            ],
            out_specs=pl.BlockSpec((1, 1), lambda i: (i, 0),
                                   memory_space=pltpu.SMEM),
        ),
        compiler_params=pltpu.CompilerParams(
            # Tiles are fully independent (each writes its own output slot), so the
            # single grid axis is parallel -> both TensorCores are used on v7x.
            dimension_semantics=("parallel",),
        ),
    )(x2, t2)

    total = jnp.sum(partials)                   # tiny (n_tiles,) reduction in XLA
    if size_average:
        total = total / jnp.float32(n)
    return total


if __name__ == "__main__":
    key = jax.random.PRNGKey(0)
    k_x, k_t = jax.random.split(key)

    # Shapes consistent with the module: probability map in (0,1) + 0/1 target mask.
    B, C, H, W = 2, 4, 16, 16
    logits = jax.random.normal(k_x, (B, C, H, W), dtype=jnp.float32)
    inputs = jax.nn.sigmoid(logits)                                    # probabilities
    targets = jax.random.bernoulli(k_t, 0.3, (B, C, H, W)).astype(jnp.int8)

    # --- test 1: mean reduction, lane-aligned size ---
    loss = focal_loss(inputs, targets, alpha=1.0, gamma=2.0, size_average=True)
    loss = jax.block_until_ready(loss)

    x_f = inputs.reshape(-1)
    t_f = targets.reshape(-1)
    probs = jnp.where(t_f != 0, x_f, 1.0 - x_f)
    ref = jnp.mean(-1.0 * (1.0 - probs) ** 2 * jnp.log(probs) + 1e-08)
    assert jnp.allclose(loss, ref, rtol=1e-5, atol=1e-6), (loss, ref)

    # --- test 2: sum reduction, odd size (exercises the masked partial tile) ---
    x_odd = x_f[:2000]
    t_odd = t_f[:2000]
    loss_sum = focal_loss(x_odd, t_odd, alpha=0.25, gamma=2.0, size_average=False)
    loss_sum = jax.block_until_ready(loss_sum)

    probs_o = jnp.where(t_odd != 0, x_odd, 1.0 - x_odd)
    ref_sum = jnp.sum(-0.25 * (1.0 - probs_o) ** 2 * jnp.log(probs_o) + 1e-08)
    assert jnp.allclose(loss_sum, ref_sum, rtol=1e-5, atol=1e-6), (loss_sum, ref_sum)

    print("KERNEL_OK")
</pallas_src>

<mosaic_0001>
module attributes {stable_mosaic.version = 11 : i64} {
  func.func @_focal_loss_kernel(%arg0: i32, %arg1: memref<16x128xf32, #tpu.memory_space<vmem>>, %arg2: memref<16x128xi8, #tpu.memory_space<vmem>>, %arg3: memref<1x1xf32, #tpu.memory_space<smem>>) attributes {dimension_semantics = [#tpu.dimension_semantics<parallel>], iteration_bounds = array<i64: 1>, scalar_prefetch = 0 : i64, scratch_operands = 0 : i64, tpu.core_type = #tpu.core_type<tc>, window_params = [{transform_indices = @transform_0, window_bounds = array<i64: 16, 128>}, {transform_indices = @transform_1, window_bounds = array<i64: 16, 128>}, {transform_indices = @transform_2, window_bounds = array<i64: 1, 1>}]} {
    %c0 = arith.constant 0 : index
    %c0_0 = arith.constant 0 : index
    %0 = vector.load %arg1[%c0, %c0_0] : memref<16x128xf32, #tpu.memory_space<vmem>>, vector<16x128xf32>
    %c0_1 = arith.constant 0 : index
    %c0_2 = arith.constant 0 : index
    %1 = vector.load %arg2[%c0_1, %c0_2] : memref<16x128xi8, #tpu.memory_space<vmem>>, vector<16x128xi8>
    %c0_i8 = arith.constant 0 : i8
    %2 = vector.broadcast %c0_i8 : i8 to vector<16x128xi8>
    %3 = arith.cmpi ne, %1, %2 : vector<16x128xi8>
    %cst = arith.constant 1.000000e+00 : f32
    %4 = vector.broadcast %cst : f32 to vector<16x128xf32>
    %5 = arith.subf %4, %0 : vector<16x128xf32>
    %6 = arith.select %3, %0, %5 : vector<16x128xi1>, vector<16x128xf32>
    %cst_3 = arith.constant 1.000000e+00 : f32
    %7 = vector.broadcast %cst_3 : f32 to vector<16x128xf32>
    %8 = arith.subf %7, %6 : vector<16x128xf32>
    %9 = math.log %6 : vector<16x128xf32>
    %10 = arith.mulf %8, %8 : vector<16x128xf32>
    %cst_4 = arith.constant -1.000000e+00 : f32
    %11 = vector.broadcast %cst_4 : f32 to vector<16x128xf32>
    %12 = arith.mulf %11, %10 : vector<16x128xf32>
    %13 = arith.mulf %12, %9 : vector<16x128xf32>
    %cst_5 = arith.constant 9.99999993E-9 : f32
    %14 = vector.broadcast %cst_5 : f32 to vector<16x128xf32>
    %15 = arith.addf %13, %14 : vector<16x128xf32>
    %16 = vector.shape_cast %15 : vector<16x128xf32> to vector<1x16x128xf32>
    %cst_6 = arith.constant dense<0.000000e+00> : vector<1xf32>
    %17 = vector.multi_reduction <add>, %16, %cst_6 [1, 2] : vector<1x16x128xf32> to vector<1xf32>
    %18 = vector.shape_cast %17 : vector<1xf32> to vector<1x1x1xf32>
    %19 = vector.extract %18[0, 0, 0] : f32 from vector<1x1x1xf32>
    %c0_7 = arith.constant 0 : index
    %c0_8 = arith.constant 0 : index
    %20 = memref.load %arg3[%c0_7, %c0_8] : memref<1x1xf32, #tpu.memory_space<smem>>
    memref.store %19, %arg3[%c0_7, %c0_8] : memref<1x1xf32, #tpu.memory_space<smem>>
    return
  }
  func.func @transform_0(%arg0: i32) -> (i32, i32) {
    %c0_i32 = arith.constant 0 : i32
    %c0_i32_0 = arith.constant 0 : i32
    return %arg0, %c0_i32 : i32, i32
  }
  func.func @transform_1(%arg0: i32) -> (i32, i32) {
    %c0_i32 = arith.constant 0 : i32
    %c0_i32_0 = arith.constant 0 : i32
    return %arg0, %c0_i32 : i32, i32
  }
  func.func @transform_2(%arg0: i32) -> (i32, i32) {
    %c0_i32 = arith.constant 0 : i32
    %c0_i32_0 = arith.constant 0 : i32
    return %arg0, %c0_i32 : i32, i32
  }
}

</mosaic_0001>

<bundles_post_ra>
// kernel: tpu_custom_call.1
= control target key start
LH: loop header
LB: loop body
LE: loop exit
PB: predicated region body
PF: predicated region fallthrough
CT: control target
= control target key end

     0   :  { %7 = vsyncpa [#allocation3], 0  ;;  %s217_s0 = inlined_call_operand.hbm [shape: f32[16,128], index: 0, kind: input, shape index: {}]   ;;  %s218_s1 = inlined_call_operand.hbm [shape: s8[16,128], index: 1, kind: input, shape index: {}]   ;;  %s219_s2 = inlined_call_operand.hbm [shape: f32[1,1], index: 2, kind: output, shape index: {}]  }
   0x1   :  { %8 = vsyncpa [#allocation6], 0 }
   0x2   :  { %9 = vsyncpa [#allocation4], 0  ;;  %s14_s11 = sshll.u32 %s217_s0, 4  ;;  %s185_s12 = smov [#allocation2]   ;;  %s15_s11 = int_to_ptr.hbm [resolvable:$true] %s14_s11 }
   0x3   :  { %s16_s13 = sshll.u32 %s185_s12, 4  ;;  %s27_s16 = sshll.u32 %s218_s1, 4  ;;  %s17_s13 = int_to_ptr.vmem [resolvable:$true] %s16_s13  ;;  %s28_s16 = int_to_ptr.hbm [resolvable:$true] %s27_s16 }
   0x4   :  { %s186_s17 = smov 128   ;;  %s187_s18 = smov 8  }
   0x5   :  { %22 = dma.hbm_to_vmem [thread:$0]  %s15_s11, 256, %s17_s13, [#allocation3], %s186_s17, %s186_s17, %s187_s18  }
   0x6   :  { %s188_s19 = smov [#allocation5]   ;;  %s189_s21 = smov 32  }
   0x7   :  { %s29_s20 = sshll.u32 %s188_s19, 4  ;;  %s190_s22 = smov 2   ;;  %s30_s20 = int_to_ptr.vmem [resolvable:$true] %s29_s20 }
   0x8   :  { %35 = dma.hbm_to_vmem [thread:$0]  %s28_s16, 64, %s30_s20, [#allocation6], %s189_s21, %s189_s21, %s190_s22  }
   0x9   :  { %179 = dma.done.wait [#allocation3], 256  }
   0xa   :  { %180 = vsyncadd [#allocation3], 4294967040 }
   0xb   :  { %181 = dma.done.wait [#allocation6], 64  }
   0xc   :  { %182 = vsyncadd [#allocation6], 4294967232  ;;  %v46_v0 = vld [vmem:[#allocation2] sm:$0xff]  ;;  %v47_v1 = vld [vmem:[#allocation2 + $0x8] sm:$0xff]  ;;  %v191_v5 = vmov 0   ;;  %s93_s23 = sshll.u32 %s219_s2, 4  ;;  %s94_s23 = int_to_ptr.hbm [resolvable:$true] %s93_s23 }
   0xd   :  { %v48_v2 = vld [vmem:[#allocation5] sm:$0x3]  ;;  %v49_v3 = vld [vmem:[#allocation5 + $0x2] sm:$0x3]  ;;  %v52_v4 = vsub.f32 1.0, %v46_v0  ;;  %v53_v7 = vsub.f32 1.0, %v47_v1 }
   0xe   :  { %vm50_vm0 = vnez %v48_v2  ;;  %vm51_vm1 = vnez %v49_v3  ;;  %s192_s25 = smov [#allocation7]  }
   0xf   :  { %v54_v6 = vsel %vm50_vm0, 16843009, %v191_v5  ;;  %v55_v8 = vsel %vm51_vm1, 16843009, %v191_v5 }
  0x10   :  { %v56_v9 = vunpack.c.0.s8 %v54_v6  ;;  %v57_v10 = vunpack.c.0.s8 %v55_v8 }
  0x12   :  { %vm58_vm2 = vcmp.ne.s32.totalorder %v56_v9, 0  ;;  %vm59_vm3 = vcmp.ne.s32.totalorder %v57_v10, 0 }
  0x13   :  { %v60_v11 = vsel %vm58_vm2, %v46_v0, %v52_v4  ;;  %v61_v12 = vsel %vm59_vm3, %v47_v1, %v53_v7 }
  0x14   :  { %v62_v13 = vsub.f32 1.0, %v60_v11  ;;  %115 = vlog2.f32 %v60_v11  ;;  %v63_v14 = vsub.f32 1.0, %v61_v12 }
  0x15   :  { %117 = vlog2.f32 %v61_v12 }
  0x16   :  { %v68_v15 = vmul.f32 %v62_v13, %v62_v13  ;;  %v69_v16 = vmul.f32 %v63_v14, %v63_v14 }
  0x18   :  { %v70_v17 = vmul.f32 -1.0, %v68_v15  ;;  %v71_v19 = vmul.f32 -1.0, %v69_v16 }
  0x1a   :  { %v116_v18 = vpop.eup %115 }
  0x1b   :  { %v118_v20 = vpop.eup %117  ;;  %v65_v21 = vmul.f32 0.6931472, %v116_v18 }
  0x1c   :  { %v67_v22 = vmul.f32 0.6931472, %v118_v20 }
  0x1d   :  { %v72_v23 = vmul.f32 %v70_v17, %v65_v21 }
  0x1e   :  { %v73_v24 = vmul.f32 %v71_v19, %v67_v22 }
  0x1f   :  { %v74_v25 = vadd.f32 1e-08, %v72_v23 }
  0x20   :  { %v75_v26 = vadd.f32 1e-08, %v73_v24 }
  0x22   :  { %v76_v27 = vadd.f32 %v75_v26, %v74_v25 }
  0x24   :  { %77 = vadd.xlane.f32.xlu0 %v76_v27 }
  0x97   :  { %v78_v28 = vpop.xlane.xlu0 %77 }
  0x98   :  { %v79_v29 = vrot.slane %v78_v28, 4 }
  0x9a   :  { %v80_v30 = vadd.f32 %v79_v29, %v78_v28 }
  0x9c   :  { %v81_v31 = vrot.slane %v80_v30, 2 }
  0x9e   :  { %v82_v32 = vadd.f32 %v81_v31, %v80_v30 }
  0xa0   :  { %v83_v33 = vrot.slane %v82_v32, 1 }
  0xa2   :  { %v84_v34 = vadd.f32 %v83_v33, %v82_v32 }
  0xa4   :  { %105 = vpush %v84_v34 }
  0xd5   :  { %s106_s24 = spop %105 }
  0xd6   :  { %87 = sst [smem:[#allocation7]] %s106_s24 }
  0xd7   :  { %96 = dma.smem_to_hbm %s192_s25, 16, %s94_s23, [#allocation4]  }
  0xd8   :  { %183 = dma.done.wait [#allocation4], 16  }
  0xd9   :  { %184 = vsyncadd [#allocation4], 4294967280 }
  0xda   :  { %101 = sfence }
  0xdb   :  { %102 = vsyncpa [#allocation3], 1 }
  0xdc   :  { %103 = vsyncpa [#allocation6], 1 }
  0xdd   :  { %104 = vsyncpa [#allocation4], 1 }

</bundles_post_ra>
